<compile_context>
chip_gen: v7x
topology: tpu7x:2x2x1
jax: 0.10.0
libtpu: 0.0.40
codegen_flags: <defaults>
</compile_context>

<pallas_src>
import numpy as np

import jax
import jax.numpy as jnp
from jax import lax
from jax.experimental import pallas as pl
from jax.experimental.pallas import tpu as pltpu


# ------------------------------- Pallas kernel --------------------------------
def _lidar_fused_kernel(taps_ref, mask_ref, w1_ref, b1_ref, w2cat_ref, b2_ref,
                        o_ref, cat_ref):
    # taps_ref : (K2*K1, N)  conv1 input taps at the composed conv2 positions,
    #                        N = B*L2, row = k2*K1 + k1, col = b*L2 + l2
    # mask_ref : (K2, N)     1.0 where the conv2 tap hits a real h1 position,
    #                        0.0 where it falls in conv2's zero padding
    # w1_ref   : (Cout, K1)  conv1 weight (Cin == 1)
    # b1_ref   : (Cout, 1)
    # w2cat_ref: (Cout, K2*Cout)  conv2 weight, column index = k2*Cout + cin
    # b2_ref   : (Cout, 1)
    # o_ref    : (Cout, N)   flattened output slab (reshaped to NCW outside)
    # cat_ref  : (K2*Cout, N) VMEM scratch: fused conv2 operand
    K2, N = mask_ref.shape
    Cout, K1 = w1_ref.shape

    # ---- conv1 + ReLU on the VPU, evaluated directly at the three shifted
    # stride-2 positions conv2 reads; results land in the (K2*Cout, N) scratch.
    for k2 in range(K2):                                   # static unroll (3)
        r0 = k2 * K1
        acc = w1_ref[:, 0:1] * taps_ref[r0:r0 + 1, :]      # (Cout,1)*(1,N)
        for k1 in range(1, K1):                            # static unroll (5)
            r = r0 + k1
            acc = acc + w1_ref[:, k1:k1 + 1] * taps_ref[r:r + 1, :]
        h = jnp.maximum(acc + b1_ref[...], 0.0)            # (Cout, N)
        # conv2 zero padding: zero out positions outside h1's valid range.
        cat_ref[k2 * Cout:(k2 + 1) * Cout, :] = h * mask_ref[k2:k2 + 1, :]

    # ---- conv2 + ReLU: one fused MXU matmul covering the whole batch.
    acc2 = jnp.dot(w2cat_ref[...], cat_ref[...],
                   preferred_element_type=jnp.float32)     # (Cout, N)
    o_ref[...] = jnp.maximum(acc2 + b2_ref[...], 0.0)


# ------------------------------- wrapper (jit) --------------------------------
@jax.jit
def lidar_cnn_forward(x_ncw, params):
    """x_ncw: (B, 1, L) float32 -> (B, Cout, L2) float32 (PyTorch NCW layout)."""
    w1 = params["w1"].astype(jnp.float32)    # (Cout, 1, K1)
    b1 = params["b1"].astype(jnp.float32)    # (Cout,)
    w2 = params["w2"].astype(jnp.float32)    # (Cout, Cout, K2)
    b2 = params["b2"].astype(jnp.float32)    # (Cout,)

    B, _, L = x_ncw.shape
    Cout, _, K1 = w1.shape
    K2 = w2.shape[-1]
    S, P1, P2 = 2, 6, 1
    L1 = (L + 2 * P1 - K1) // S + 1
    L2 = (L1 + 2 * P2 - K2) // S + 1
    N = B * L2
    Lp = L + 2 * P1

    # Static (numpy) index plumbing: conv2 tap k2 at output l2 reads h1 at
    # position p = S*l2 + k2 - P2; conv1 computes that from x_pad[S*p + k1].
    # Out-of-range p (conv2's zero padding) is masked after ReLU.
    p = S * np.arange(L2)[None, :] + np.arange(K2)[:, None] - P2        # (K2, L2)
    valid = ((p >= 0) & (p < L1)).astype(np.float32)                    # (K2, L2)
    xidx = np.clip(S * p[:, :, None] + np.arange(K1)[None, None, :],
                   0, Lp - 1)                                           # (K2, L2, K1)

    x_pad = jnp.pad(x_ncw[:, 0, :].astype(jnp.float32), ((0, 0), (P1, P1)))  # (B, Lp)
    taps = x_pad[:, xidx]                                               # (B, K2, L2, K1)
    taps = jnp.transpose(taps, (1, 3, 0, 2)).reshape(K2 * K1, N)        # (K2*K1, B*L2)
    mask = jnp.asarray(np.tile(valid[:, None, :], (1, B, 1)).reshape(K2, N))

    w1_mat = w1[:, 0, :]                                                # (Cout, K1)
    b1_col = b1.reshape(Cout, 1)
    w2_cat = jnp.transpose(w2, (0, 2, 1)).reshape(Cout, K2 * Cout)      # col = k2*Cout+cin
    b2_col = b2.reshape(Cout, 1)

    out_flat = pl.pallas_call(
        _lidar_fused_kernel,
        out_shape=jax.ShapeDtypeStruct((Cout, N), jnp.float32),
        scratch_shapes=[pltpu.VMEM((K2 * Cout, N), jnp.float32)],
    )(taps, mask, w1_mat, b1_col, w2_cat, b2_col)

    # Back to PyTorch NCW layout (cheap XLA reshape/transpose under jit).
    return jnp.transpose(out_flat.reshape(Cout, B, L2), (1, 0, 2))


# ----------------------------- reference (JAX) --------------------------------
def _ref_forward(x_ncw, params):
    def conv1d(x, w, b, stride, padding):
        y = lax.conv_general_dilated(
            x, w, window_strides=(stride,), padding=[(padding, padding)],
            dimension_numbers=("NCH", "OIH", "NCH"))
        return jax.nn.relu(y + b[None, :, None])

    h = conv1d(x_ncw, params["w1"], params["b1"], 2, 6)
    return conv1d(h, params["w2"], params["b2"], 2, 1)


# ---------------------------------- main ---------------------------------------
if __name__ == "__main__":
    key = jax.random.PRNGKey(0)
    k_x, k_w1, k_b1, k_w2, k_b2 = jax.random.split(key, 5)

    lidar_dim = 16     # input scan length
    output_dim = 32    # conv channels (module default)
    batch = 2

    # Deterministic synthetic parameters (PyTorch Conv1d weight shapes).
    params = {
        "w1": jax.random.normal(k_w1, (output_dim, 1, 5), jnp.float32) * 0.2,
        "b1": jax.random.normal(k_b1, (output_dim,), jnp.float32) * 0.1,
        "w2": jax.random.normal(k_w2, (output_dim, output_dim, 3), jnp.float32) * 0.1,
        "b2": jax.random.normal(k_b2, (output_dim,), jnp.float32) * 0.1,
    }

    x = jax.random.normal(k_x, (batch, 1, lidar_dim), jnp.float32)  # NCW like PyTorch

    out = jax.block_until_ready(lidar_cnn_forward(x, params))
    ref = jax.block_until_ready(_ref_forward(x, params))

    assert out.shape == ref.shape, (out.shape, ref.shape)
    assert jnp.allclose(out, ref, atol=1e-4, rtol=1e-4), float(jnp.max(jnp.abs(out - ref)))
    print("KERNEL_OK")
</pallas_src>

<mosaic_0001>
module attributes {stable_mosaic.version = 11 : i64} {
  func.func @_lidar_fused_kernel(%arg0: memref<15x12xf32, #tpu.memory_space<vmem>>, %arg1: memref<3x12xf32, #tpu.memory_space<vmem>>, %arg2: memref<32x5xf32, #tpu.memory_space<vmem>>, %arg3: memref<32x1xf32, #tpu.memory_space<vmem>>, %arg4: memref<32x96xf32, #tpu.memory_space<vmem>>, %arg5: memref<32x1xf32, #tpu.memory_space<vmem>>, %arg6: memref<32x12xf32, #tpu.memory_space<vmem>>, %arg7: memref<96x12xf32, #tpu.memory_space<vmem>>) attributes {dimension_semantics = [], scalar_prefetch = 0 : i64, scratch_operands = 1 : i64, tpu.core_type = #tpu.core_type<tc>} {
    %c0 = arith.constant 0 : index
    %c0_0 = arith.constant 0 : index
    %0 = vector.load %arg2[%c0, %c0_0] : memref<32x5xf32, #tpu.memory_space<vmem>>, vector<32x1xf32>
    %c0_1 = arith.constant 0 : index
    %c0_2 = arith.constant 0 : index
    %1 = vector.load %arg0[%c0_1, %c0_2] : memref<15x12xf32, #tpu.memory_space<vmem>>, vector<1x12xf32>
    %2 = vector.broadcast %0 : vector<32x1xf32> to vector<32x12xf32>
    %3 = vector.broadcast %1 : vector<1x12xf32> to vector<32x12xf32>
    %4 = arith.mulf %2, %3 : vector<32x12xf32>
    %c0_3 = arith.constant 0 : index
    %c1 = arith.constant 1 : index
    %5 = vector.load %arg2[%c0_3, %c1] : memref<32x5xf32, #tpu.memory_space<vmem>>, vector<32x1xf32>
    %c1_4 = arith.constant 1 : index
    %c0_5 = arith.constant 0 : index
    %6 = vector.load %arg0[%c1_4, %c0_5] : memref<15x12xf32, #tpu.memory_space<vmem>>, vector<1x12xf32>
    %7 = vector.broadcast %5 : vector<32x1xf32> to vector<32x12xf32>
    %8 = vector.broadcast %6 : vector<1x12xf32> to vector<32x12xf32>
    %9 = arith.mulf %7, %8 : vector<32x12xf32>
    %10 = arith.addf %4, %9 : vector<32x12xf32>
    %c0_6 = arith.constant 0 : index
    %c2 = arith.constant 2 : index
    %11 = vector.load %arg2[%c0_6, %c2] : memref<32x5xf32, #tpu.memory_space<vmem>>, vector<32x1xf32>
    %c2_7 = arith.constant 2 : index
    %c0_8 = arith.constant 0 : index
    %12 = vector.load %arg0[%c2_7, %c0_8] : memref<15x12xf32, #tpu.memory_space<vmem>>, vector<1x12xf32>
    %13 = vector.broadcast %11 : vector<32x1xf32> to vector<32x12xf32>
    %14 = vector.broadcast %12 : vector<1x12xf32> to vector<32x12xf32>
    %15 = arith.mulf %13, %14 : vector<32x12xf32>
    %16 = arith.addf %10, %15 : vector<32x12xf32>
    %c0_9 = arith.constant 0 : index
    %c3 = arith.constant 3 : index
    %17 = vector.load %arg2[%c0_9, %c3] : memref<32x5xf32, #tpu.memory_space<vmem>>, vector<32x1xf32>
    %c3_10 = arith.constant 3 : index
    %c0_11 = arith.constant 0 : index
    %18 = vector.load %arg0[%c3_10, %c0_11] : memref<15x12xf32, #tpu.memory_space<vmem>>, vector<1x12xf32>
    %19 = vector.broadcast %17 : vector<32x1xf32> to vector<32x12xf32>
    %20 = vector.broadcast %18 : vector<1x12xf32> to vector<32x12xf32>
    %21 = arith.mulf %19, %20 : vector<32x12xf32>
    %22 = arith.addf %16, %21 : vector<32x12xf32>
    %c0_12 = arith.constant 0 : index
    %c4 = arith.constant 4 : index
    %23 = vector.load %arg2[%c0_12, %c4] : memref<32x5xf32, #tpu.memory_space<vmem>>, vector<32x1xf32>
    %c4_13 = arith.constant 4 : index
    %c0_14 = arith.constant 0 : index
    %24 = vector.load %arg0[%c4_13, %c0_14] : memref<15x12xf32, #tpu.memory_space<vmem>>, vector<1x12xf32>
    %25 = vector.broadcast %23 : vector<32x1xf32> to vector<32x12xf32>
    %26 = vector.broadcast %24 : vector<1x12xf32> to vector<32x12xf32>
    %27 = arith.mulf %25, %26 : vector<32x12xf32>
    %28 = arith.addf %22, %27 : vector<32x12xf32>
    %c0_15 = arith.constant 0 : index
    %c0_16 = arith.constant 0 : index
    %29 = vector.load %arg3[%c0_15, %c0_16] : memref<32x1xf32, #tpu.memory_space<vmem>>, vector<32x1xf32>
    %30 = vector.broadcast %29 : vector<32x1xf32> to vector<32x12xf32>
    %31 = arith.addf %28, %30 : vector<32x12xf32>
    %cst = arith.constant 0.000000e+00 : f32
    %32 = vector.broadcast %cst : f32 to vector<32x12xf32>
    %33 = arith.maximumf %31, %32 : vector<32x12xf32>
    %c0_17 = arith.constant 0 : index
    %c0_18 = arith.constant 0 : index
    %34 = vector.load %arg1[%c0_17, %c0_18] : memref<3x12xf32, #tpu.memory_space<vmem>>, vector<1x12xf32>
    %35 = vector.broadcast %34 : vector<1x12xf32> to vector<32x12xf32>
    %36 = arith.mulf %33, %35 : vector<32x12xf32>
    %c0_19 = arith.constant 0 : index
    %c0_20 = arith.constant 0 : index
    %37 = vector.load %arg7[%c0_19, %c0_20] : memref<96x12xf32, #tpu.memory_space<vmem>>, vector<32x12xf32>
    tpu.vector_store %arg7[%c0_19, %c0_20], %36 {strides = array<i32>} : memref<96x12xf32, #tpu.memory_space<vmem>>, vector<32x12xf32>,
    %c0_21 = arith.constant 0 : index
    %c0_22 = arith.constant 0 : index
    %38 = vector.load %arg2[%c0_21, %c0_22] : memref<32x5xf32, #tpu.memory_space<vmem>>, vector<32x1xf32>
    %c5 = arith.constant 5 : index
    %c0_23 = arith.constant 0 : index
    %39 = vector.load %arg0[%c5, %c0_23] : memref<15x12xf32, #tpu.memory_space<vmem>>, vector<1x12xf32>
    %40 = vector.broadcast %38 : vector<32x1xf32> to vector<32x12xf32>
    %41 = vector.broadcast %39 : vector<1x12xf32> to vector<32x12xf32>
    %42 = arith.mulf %40, %41 : vector<32x12xf32>
    %c0_24 = arith.constant 0 : index
    %c1_25 = arith.constant 1 : index
    %43 = vector.load %arg2[%c0_24, %c1_25] : memref<32x5xf32, #tpu.memory_space<vmem>>, vector<32x1xf32>
    %c6 = arith.constant 6 : index
    %c0_26 = arith.constant 0 : index
    %44 = vector.load %arg0[%c6, %c0_26] : memref<15x12xf32, #tpu.memory_space<vmem>>, vector<1x12xf32>
    %45 = vector.broadcast %43 : vector<32x1xf32> to vector<32x12xf32>
    %46 = vector.broadcast %44 : vector<1x12xf32> to vector<32x12xf32>
    %47 = arith.mulf %45, %46 : vector<32x12xf32>
    %48 = arith.addf %42, %47 : vector<32x12xf32>
    %c0_27 = arith.constant 0 : index
    %c2_28 = arith.constant 2 : index
    %49 = vector.load %arg2[%c0_27, %c2_28] : memref<32x5xf32, #tpu.memory_space<vmem>>, vector<32x1xf32>
    %c7 = arith.constant 7 : index
    %c0_29 = arith.constant 0 : index
    %50 = vector.load %arg0[%c7, %c0_29] : memref<15x12xf32, #tpu.memory_space<vmem>>, vector<1x12xf32>
    %51 = vector.broadcast %49 : vector<32x1xf32> to vector<32x12xf32>
    %52 = vector.broadcast %50 : vector<1x12xf32> to vector<32x12xf32>
    %53 = arith.mulf %51, %52 : vector<32x12xf32>
    %54 = arith.addf %48, %53 : vector<32x12xf32>
    %c0_30 = arith.constant 0 : index
    %c3_31 = arith.constant 3 : index
    %55 = vector.load %arg2[%c0_30, %c3_31] : memref<32x5xf32, #tpu.memory_space<vmem>>, vector<32x1xf32>
    %c8 = arith.constant 8 : index
    %c0_32 = arith.constant 0 : index
    %56 = vector.load %arg0[%c8, %c0_32] : memref<15x12xf32, #tpu.memory_space<vmem>>, vector<1x12xf32>
    %57 = vector.broadcast %55 : vector<32x1xf32> to vector<32x12xf32>
    %58 = vector.broadcast %56 : vector<1x12xf32> to vector<32x12xf32>
    %59 = arith.mulf %57, %58 : vector<32x12xf32>
    %60 = arith.addf %54, %59 : vector<32x12xf32>
    %c0_33 = arith.constant 0 : index
    %c4_34 = arith.constant 4 : index
    %61 = vector.load %arg2[%c0_33, %c4_34] : memref<32x5xf32, #tpu.memory_space<vmem>>, vector<32x1xf32>
    %c9 = arith.constant 9 : index
    %c0_35 = arith.constant 0 : index
    %62 = vector.load %arg0[%c9, %c0_35] : memref<15x12xf32, #tpu.memory_space<vmem>>, vector<1x12xf32>
    %63 = vector.broadcast %61 : vector<32x1xf32> to vector<32x12xf32>
    %64 = vector.broadcast %62 : vector<1x12xf32> to vector<32x12xf32>
    %65 = arith.mulf %63, %64 : vector<32x12xf32>
    %66 = arith.addf %60, %65 : vector<32x12xf32>
    %c0_36 = arith.constant 0 : index
    %c0_37 = arith.constant 0 : index
    %67 = vector.load %arg3[%c0_36, %c0_37] : memref<32x1xf32, #tpu.memory_space<vmem>>, vector<32x1xf32>
    %68 = vector.broadcast %67 : vector<32x1xf32> to vector<32x12xf32>
    %69 = arith.addf %66, %68 : vector<32x12xf32>
    %cst_38 = arith.constant 0.000000e+00 : f32
    %70 = vector.broadcast %cst_38 : f32 to vector<32x12xf32>
    %71 = arith.maximumf %69, %70 : vector<32x12xf32>
    %c1_39 = arith.constant 1 : index
    %c0_40 = arith.constant 0 : index
    %72 = vector.load %arg1[%c1_39, %c0_40] : memref<3x12xf32, #tpu.memory_space<vmem>>, vector<1x12xf32>
    %73 = vector.broadcast %72 : vector<1x12xf32> to vector<32x12xf32>
    %74 = arith.mulf %71, %73 : vector<32x12xf32>
    %c32 = arith.constant 32 : index
    %c0_41 = arith.constant 0 : index
    %75 = vector.load %arg7[%c32, %c0_41] : memref<96x12xf32, #tpu.memory_space<vmem>>, vector<32x12xf32>
    tpu.vector_store %arg7[%c32, %c0_41], %74 {strides = array<i32>} : memref<96x12xf32, #tpu.memory_space<vmem>>, vector<32x12xf32>,
    %c0_42 = arith.constant 0 : index
    %c0_43 = arith.constant 0 : index
    %76 = vector.load %arg2[%c0_42, %c0_43] : memref<32x5xf32, #tpu.memory_space<vmem>>, vector<32x1xf32>
    %c10 = arith.constant 10 : index
    %c0_44 = arith.constant 0 : index
    %77 = vector.load %arg0[%c10, %c0_44] : memref<15x12xf32, #tpu.memory_space<vmem>>, vector<1x12xf32>
    %78 = vector.broadcast %76 : vector<32x1xf32> to vector<32x12xf32>
    %79 = vector.broadcast %77 : vector<1x12xf32> to vector<32x12xf32>
    %80 = arith.mulf %78, %79 : vector<32x12xf32>
    %c0_45 = arith.constant 0 : index
    %c1_46 = arith.constant 1 : index
    %81 = vector.load %arg2[%c0_45, %c1_46] : memref<32x5xf32, #tpu.memory_space<vmem>>, vector<32x1xf32>
    %c11 = arith.constant 11 : index
    %c0_47 = arith.constant 0 : index
    %82 = vector.load %arg0[%c11, %c0_47] : memref<15x12xf32, #tpu.memory_space<vmem>>, vector<1x12xf32>
    %83 = vector.broadcast %81 : vector<32x1xf32> to vector<32x12xf32>
    %84 = vector.broadcast %82 : vector<1x12xf32> to vector<32x12xf32>
    %85 = arith.mulf %83, %84 : vector<32x12xf32>
    %86 = arith.addf %80, %85 : vector<32x12xf32>
    %c0_48 = arith.constant 0 : index
    %c2_49 = arith.constant 2 : index
    %87 = vector.load %arg2[%c0_48, %c2_49] : memref<32x5xf32, #tpu.memory_space<vmem>>, vector<32x1xf32>
    %c12 = arith.constant 12 : index
    %c0_50 = arith.constant 0 : index
    %88 = vector.load %arg0[%c12, %c0_50] : memref<15x12xf32, #tpu.memory_space<vmem>>, vector<1x12xf32>
    %89 = vector.broadcast %87 : vector<32x1xf32> to vector<32x12xf32>
    %90 = vector.broadcast %88 : vector<1x12xf32> to vector<32x12xf32>
    %91 = arith.mulf %89, %90 : vector<32x12xf32>
    %92 = arith.addf %86, %91 : vector<32x12xf32>
    %c0_51 = arith.constant 0 : index
    %c3_52 = arith.constant 3 : index
    %93 = vector.load %arg2[%c0_51, %c3_52] : memref<32x5xf32, #tpu.memory_space<vmem>>, vector<32x1xf32>
    %c13 = arith.constant 13 : index
    %c0_53 = arith.constant 0 : index
    %94 = vector.load %arg0[%c13, %c0_53] : memref<15x12xf32, #tpu.memory_space<vmem>>, vector<1x12xf32>
    %95 = vector.broadcast %93 : vector<32x1xf32> to vector<32x12xf32>
    %96 = vector.broadcast %94 : vector<1x12xf32> to vector<32x12xf32>
    %97 = arith.mulf %95, %96 : vector<32x12xf32>
    %98 = arith.addf %92, %97 : vector<32x12xf32>
    %c0_54 = arith.constant 0 : index
    %c4_55 = arith.constant 4 : index
    %99 = vector.load %arg2[%c0_54, %c4_55] : memref<32x5xf32, #tpu.memory_space<vmem>>, vector<32x1xf32>
    %c14 = arith.constant 14 : index
    %c0_56 = arith.constant 0 : index
    %100 = vector.load %arg0[%c14, %c0_56] : memref<15x12xf32, #tpu.memory_space<vmem>>, vector<1x12xf32>
    %101 = vector.broadcast %99 : vector<32x1xf32> to vector<32x12xf32>
    %102 = vector.broadcast %100 : vector<1x12xf32> to vector<32x12xf32>
    %103 = arith.mulf %101, %102 : vector<32x12xf32>
    %104 = arith.addf %98, %103 : vector<32x12xf32>
    %c0_57 = arith.constant 0 : index
    %c0_58 = arith.constant 0 : index
    %105 = vector.load %arg3[%c0_57, %c0_58] : memref<32x1xf32, #tpu.memory_space<vmem>>, vector<32x1xf32>
    %106 = vector.broadcast %105 : vector<32x1xf32> to vector<32x12xf32>
    %107 = arith.addf %104, %106 : vector<32x12xf32>
    %cst_59 = arith.constant 0.000000e+00 : f32
    %108 = vector.broadcast %cst_59 : f32 to vector<32x12xf32>
    %109 = arith.maximumf %107, %108 : vector<32x12xf32>
    %c2_60 = arith.constant 2 : index
    %c0_61 = arith.constant 0 : index
    %110 = vector.load %arg1[%c2_60, %c0_61] : memref<3x12xf32, #tpu.memory_space<vmem>>, vector<1x12xf32>
    %111 = vector.broadcast %110 : vector<1x12xf32> to vector<32x12xf32>
    %112 = arith.mulf %109, %111 : vector<32x12xf32>
    %c64 = arith.constant 64 : index
    %c0_62 = arith.constant 0 : index
    %113 = vector.load %arg7[%c64, %c0_62] : memref<96x12xf32, #tpu.memory_space<vmem>>, vector<32x12xf32>
    tpu.vector_store %arg7[%c64, %c0_62], %112 {strides = array<i32>} : memref<96x12xf32, #tpu.memory_space<vmem>>, vector<32x12xf32>,
    %c0_63 = arith.constant 0 : index
    %c0_64 = arith.constant 0 : index
    %114 = vector.load %arg4[%c0_63, %c0_64] : memref<32x96xf32, #tpu.memory_space<vmem>>, vector<32x96xf32>
    %c0_65 = arith.constant 0 : index
    %c0_66 = arith.constant 0 : index
    %115 = vector.load %arg7[%c0_65, %c0_66] : memref<96x12xf32, #tpu.memory_space<vmem>>, vector<96x12xf32>
    %cst_67 = arith.constant dense<0.000000e+00> : vector<32x12xf32>
    %116 = tpu.matmul %114, %115, %cst_67 {dimension_numbers = #tpu.dot_dimension_numbers<[1], [0], [0], [1], [0, 0, 1, 1], [], []>} : vector<32x96xf32>, vector<96x12xf32>, vector<32x12xf32> -> vector<32x12xf32>
    %c0_68 = arith.constant 0 : index
    %c0_69 = arith.constant 0 : index
    %117 = vector.load %arg5[%c0_68, %c0_69] : memref<32x1xf32, #tpu.memory_space<vmem>>, vector<32x1xf32>
    %118 = vector.broadcast %117 : vector<32x1xf32> to vector<32x12xf32>
    %119 = arith.addf %116, %118 : vector<32x12xf32>
    %cst_70 = arith.constant 0.000000e+00 : f32
    %120 = vector.broadcast %cst_70 : f32 to vector<32x12xf32>
    %121 = arith.maximumf %119, %120 : vector<32x12xf32>
    %c0_71 = arith.constant 0 : index
    %c0_72 = arith.constant 0 : index
    %122 = vector.load %arg6[%c0_71, %c0_72] : memref<32x12xf32, #tpu.memory_space<vmem>>, vector<32x12xf32>
    tpu.vector_store %arg6[%c0_71, %c0_72], %121 {strides = array<i32>} : memref<32x12xf32, #tpu.memory_space<vmem>>, vector<32x12xf32>,
    return
  }
}

</mosaic_0001>

<bundles_post_ra>
// kernel: lidar_cnn_forward.1
= control target key start
LH: loop header
LB: loop body
LE: loop exit
PB: predicated region body
PF: predicated region fallthrough
CT: control target
= control target key end

     0   :  { %v905_v0 = vmov 1   ;;  %v906_v1 = vmov 0   ;;  %v907_v5 = vmov 2   ;;  %v908_v9 = vmov 3   ;;  %s1370_s2 = inlined_call_operand.vmem [shape: f32[32,5], index: 2, kind: input, shape index: {}]   ;;  %s1371_s3 = inlined_call_operand.vmem [shape: f32[32,1], index: 3, kind: input, shape index: {}]   ;;  %s1372_s5 = inlined_call_operand.vmem [shape: f32[32,1], index: 5, kind: input, shape index: {}]   ;;  %s1373_s0 = inlined_call_operand.vmem [shape: f32[15,12], index: 0, kind: input, shape index: {}]   ;;  %s1374_s1 = inlined_call_operand.vmem [shape: f32[3,12], index: 1, kind: input, shape index: {}]   ;;  %s1375_s4 = inlined_call_operand.vmem [shape: f32[32,96], index: 4, kind: input, shape index: {}]   ;;  %s1376_s6 = inlined_call_operand.vmem [shape: f32[32,12], index: 6, kind: output, shape index: {}]  }
   0x1   :  { %866 = vset.pattern.permute.xlu1 %v905_v0  ;;  %865 = vset.pattern.permute.xlu0 %v906_v1  ;;  %v950_v2 = vld [vmem:[%s1370_s2] sm:$0xff]  ;;  %v957_v3 = vld [vmem:[%s1370_s2 + $0x8] sm:$0xff]  ;;  %v964_v4 = vld [vmem:[%s1370_s2 + $0x18] sm:$0xff]  ;;  %v909_v10 = vmov 4   ;;  %vm213_vm0 = vcmask 97280   ;;  %vm646_vm1 = vcmask 785408  }
   0x2   :  { %58 = vperm.xlu1 %866, %v950_v2   ;;  %30 = vperm.xlu0 %865, %v950_v2   ;;  %v972_v6 = vld [vmem:[%s1370_s2 + $0x10] sm:$0xff]  ;;  %v979_v7 = vld [vmem:[%s1371_s3 + $0x8] sm:$0xff]  ;;  %v367_v8 = vld [vmem:[%s1371_s3] sm:$0xff] }
   0x3   :  { %v1040_v11 = vld [vmem:[%s1371_s3 + $0x10] sm:$0xff]  ;;  %v1048_v12 = vld [vmem:[%s1371_s3 + $0x18] sm:$0xff]  ;;  %v623_v13 = vld [vmem:[%s1372_s5 + $0x8] sm:$0xff] }
   0x4   :  { %v625_v14 = vld [vmem:[%s1372_s5 + $0x18] sm:$0xff]  ;;  %v1081_v24 = vld [vmem:[%s1373_s0 + $0x1] ss:$0 sm:$0xff]  ;;  %v1086_v25 = vld [vmem:[%s1373_s0] ss:$0 sm:$0xff] }
   0x5   :  { %v1109_v38 = vld [vmem:[%s1373_s0 + $0x5] ss:$0 sm:$0xff]  ;;  %v1117_v42 = vld [vmem:[%s1373_s0 + $0x6] ss:$0 sm:$0xff]  ;;  %v1122_v43 = vld [vmem:[%s1373_s0 + $0x2] ss:$0 sm:$0xff] }
   0x6   :  { %62 = vperm.xlu1 %866, %v957_v3   ;;  %35 = vperm.xlu0 %865, %v957_v3   ;;  %v1131_v47 = vld [vmem:[%s1373_s0 + $0x3] ss:$0 sm:$0xff]  ;;  %v1146_v56 = vld [vmem:[%s1373_s0 + $0x4] ss:$0 sm:$0xff] }
   0xa   :  { %867 = vset.pattern.permute.xlu1 %v907_v5  ;;  %45 = vperm.xlu0 %865, %v964_v4  }
   0xb   :  { %91 = vperm.xlu1 %867, %v957_v3  }
   0xe   :  { %230 = vperm.xlu0 %865, %v957_v3  }
   0xf   :  { %868 = vset.pattern.permute.xlu1 %v906_v1 }
  0x10   :  { %40 = vperm.xlu1 %868, %v972_v6  }
  0x12   :  { %183 = vperm.xlu0 %865, %v979_v7  }
  0x14   :  { %869 = vset.pattern.permute.xlu1 %v905_v0 }
  0x15   :  { %66 = vperm.xlu1 %869, %v972_v6  }
  0x16   :  { %235 = vperm.xlu0 %865, %v972_v6  }
  0x19   :  { %70 = vperm.xlu1 %869, %v964_v4  }
  0x1a   :  { %419 = vperm.xlu0 %865, %v950_v2  }
  0x1d   :  { %870 = vset.pattern.permute.xlu1 %v908_v9 }
  0x1e   :  { %120 = vperm.xlu1 %870, %v957_v3   ;;  %373 = vperm.xlu0 %865, %v367_v8  }
  0x22   :  { %871 = vset.pattern.permute.xlu1 %v907_v5  ;;  %889 = vset.pattern.permute.xlu0 %v905_v0 }
  0x23   :  { %95 = vperm.xlu1 %871, %v972_v6   ;;  %261 = vperm.xlu0 %889, %v972_v6  }
  0x27   :  { %872 = vset.pattern.permute.xlu1 %v909_v10  ;;  %451 = vperm.xlu0 %889, %v957_v3  }
  0x28   :  { %145 = vperm.xlu1 %872, %v950_v2  }
  0x2b   :  { %455 = vperm.xlu0 %889, %v972_v6  }
  0x2c   :  { %149 = vperm.xlu1 %872, %v957_v3  }
  0x2f   :  { %893 = vset.pattern.permute.xlu0 %v908_v9 }
  0x30   :  { %873 = vset.pattern.permute.xlu1 %v908_v9  ;;  %116 = vperm.xlu0 %893, %v950_v2  }
  0x31   :  { %128 = vperm.xlu1 %873, %v964_v4  }
  0x34   :  { %124 = vperm.xlu0 %893, %v972_v6  }
  0x35   :  { %874 = vset.pattern.permute.xlu1 %v906_v1 }
  0x36   :  { %225 = vperm.xlu1 %874, %v950_v2  }
  0x38   :  { %315 = vperm.xlu0 %893, %v957_v3  }
  0x3a   :  { %875 = vset.pattern.permute.xlu1 %v905_v0 }
  0x3b   :  { %253 = vperm.xlu1 %875, %v950_v2  }
  0x3c   :  { %509 = vperm.xlu0 %893, %v957_v3  }
  0x3f   :  { %257 = vperm.xlu1 %875, %v957_v3  }
  0x40   :  { %896 = vset.pattern.permute.xlu0 %v907_v5 }
  0x41   :  { %87 = vperm.xlu0 %896, %v950_v2  }
  0x43   :  { %876 = vset.pattern.permute.xlu1 %v909_v10 }
  0x44   :  { %157 = vperm.xlu1 %876, %v964_v4  }
  0x45   :  { %99 = vperm.xlu0 %896, %v964_v4  }
  0x48   :  { %877 = vset.pattern.permute.xlu1 %v906_v1 }
  0x49   :  { %178 = vperm.xlu1 %877, %v367_v8   ;;  %290 = vperm.xlu0 %896, %v972_v6  }
  0x4d   :  { %878 = vset.pattern.permute.xlu1 %v907_v5  ;;  %480 = vperm.xlu0 %896, %v957_v3  }
  0x4e   :  { %282 = vperm.xlu1 %878, %v950_v2  }
  0x51   :  { %484 = vperm.xlu0 %896, %v972_v6  }
  0x52   :  { %286 = vperm.xlu1 %878, %v957_v3  }
  0x55   :  { %898 = vset.pattern.permute.xlu0 %v909_v10 }
  0x56   :  { %879 = vset.pattern.permute.xlu1 %v906_v1  ;;  %153 = vperm.xlu0 %898, %v972_v6  }
  0x57   :  { %240 = vperm.xlu1 %879, %v964_v4  }
  0x5a   :  { %344 = vperm.xlu0 %898, %v957_v3  }
  0x5b   :  { %880 = vset.pattern.permute.xlu1 %v905_v0 }
  0x5c   :  { %265 = vperm.xlu1 %880, %v964_v4  }
  0x5e   :  { %538 = vperm.xlu0 %898, %v957_v3  }
  0x60   :  { %881 = vset.pattern.permute.xlu1 %v908_v9 }
  0x61   :  { %311 = vperm.xlu1 %881, %v950_v2  }
  0x62   :  { %542 = vperm.xlu0 %898, %v972_v6  }
  0x65   :  { %882 = vset.pattern.permute.xlu1 %v906_v1 }
  0x66   :  { %188 = vperm.xlu1 %882, %v1040_v11   ;;  %903 = vset.pattern.permute.xlu0 %v906_v1 }
  0x67   :  { %567 = vperm.xlu0 %903, %v367_v8  }
  0x6a   :  { %193 = vperm.xlu1 %882, %v1048_v12  }
  0x6b   :  { %582 = vperm.xlu0 %903, %v1048_v12  }
  0x6e   :  { %883 = vset.pattern.permute.xlu1 %v907_v5 }
  0x6f   :  { %294 = vperm.xlu1 %883, %v964_v4   ;;  %633 = vperm.xlu0 %903, %v623_v13  }
  0x73   :  { %884 = vset.pattern.permute.xlu1 %v909_v10  ;;  %643 = vperm.xlu0 %903, %v625_v14  }
  0x74   :  { %340 = vperm.xlu1 %884, %v950_v2  }
  0x78   :  { %885 = vset.pattern.permute.xlu1 %v908_v9 }
  0x79   :  { %319 = vperm.xlu1 %885, %v972_v6  }
  0x7d   :  { %323 = vperm.xlu1 %885, %v964_v4  }
  0x81   :  { %886 = vset.pattern.permute.xlu1 %v906_v1  ;;  %v1066_v15 = vpop.permute.xlu1 %58  ;;  %v1068_v16 = vpop.permute.xlu0 %30 }
  0x82   :  { %424 = vperm.xlu1 %886, %v957_v3  }
  0x85   :  { %v63_v17 = vpop.permute.xlu1 %62  ;;  %v36_v18 = vpop.permute.xlu0 %35 }
  0x86   :  { %887 = vset.pattern.permute.xlu1 %v905_v0  ;;  %v78_v45 = vmul.f32 %v1081_v24, %v63_v17  ;;  %v53_v46 = vmul.f32 %v1086_v25, %v36_v18 }
  0x87   :  { %447 = vperm.xlu1 %887, %v950_v2  }
  0x88   :  { %v82_v52 = vadd.f32 %v78_v45, %v53_v46  ;;  %v1203_v46 = vld [vmem:[%s1373_s0 + $0x8] ss:$0 sm:$0xff] }
  0x89   :  { %v46_v19 = vpop.permute.xlu0 %45 }
  0x8a   :  { %v92_v20 = vpop.permute.xlu1 %91  ;;  %v55_v30 = vmul.f32 %v1086_v25, %v46_v19 }
  0x8b   :  { %888 = vset.pattern.permute.xlu1 %v909_v10  ;;  %v107_v49 = vmul.f32 %v1122_v43, %v92_v20  ;;  %v77_v20 = vmul.f32 %v1081_v24, %v1066_v15 }
  0x8c   :  { %348 = vperm.xlu1 %888, %v972_v6  }
  0x8d   :  { %v1075_v21 = vpop.permute.xlu0 %230  ;;  %v111_v54 = vadd.f32 %v107_v49, %v82_v52 }
  0x8f   :  { %v41_v22 = vpop.permute.xlu1 %40 }
  0x90   :  { %352 = vperm.xlu1 %888, %v964_v4   ;;  %v54_v27 = vmul.f32 %v1086_v25, %v41_v22  ;;  %v52_v22 = vmul.f32 %v1086_v25, %v1068_v16 }
  0x91   :  { %v184_v23 = vpop.permute.xlu0 %183 }
  0x94   :  { %890 = vset.pattern.permute.xlu1 %v906_v1  ;;  %v67_v26 = vpop.permute.xlu1 %66 }
  0x95   :  { %v79_v28 = vmul.f32 %v1081_v24, %v67_v26  ;;  %378 = vperm.xlu1 %890, %v979_v7   ;;  %v236_v29 = vpop.permute.xlu0 %235 }
  0x96   :  { %v249_v39 = vmul.f32 %v1109_v38, %v236_v29 }
  0x97   :  { %v1093_v31 = vadd.f32 %v79_v28, %v54_v27  ;;  %v81_v27 = vadd.f32 %v77_v20, %v52_v22 }
  0x98   :  { %v71_v32 = vpop.permute.xlu1 %70 }
  0x99   :  { %v80_v33 = vmul.f32 %v1081_v24, %v71_v32  ;;  %891 = vset.pattern.permute.xlu1 %v907_v5  ;;  %v1097_v34 = vpop.permute.xlu0 %419 }
  0x9a   :  { %476 = vperm.xlu1 %891, %v950_v2  }
  0x9b   :  { %v1100_v35 = vadd.f32 %v80_v33, %v55_v30 }
  0x9d   :  { %v121_v36 = vpop.permute.xlu1 %120  ;;  %v1102_v37 = vpop.permute.xlu0 %373 }
  0x9e   :  { %892 = vset.pattern.permute.xlu1 %v906_v1  ;;  %v136_v53 = vmul.f32 %v1131_v47, %v121_v36  ;;  %v1190_v36 = vld [vmem:[%s1373_s0 + $0x7] ss:$0 sm:$0xff] }
  0x9f   :  { %429 = vperm.xlu1 %892, %v972_v6  }
  0xa0   :  { %v140_v58 = vadd.f32 %v136_v53, %v111_v54 }
  0xa2   :  { %v1112_v40 = vpop.permute.xlu1 %95  ;;  %v262_v41 = vpop.permute.xlu0 %261 }
  0xa3   :  { %434 = vperm.xlu1 %892, %v964_v4   ;;  %v274_v44 = vmul.f32 %v1117_v42, %v262_v41 }
  0xa5   :  { %v1133_v48 = vadd.f32 %v274_v44, %v249_v39 }
  0xa6   :  { %v1136_v50 = vpop.permute.xlu0 %451 }
  0xa7   :  { %894 = vset.pattern.permute.xlu1 %v905_v0  ;;  %v146_v51 = vpop.permute.xlu1 %145  ;;  %v1156_v0 = vld [vmem:[%s1374_s1] ss:$0 sm:$0xff] }
  0xa8   :  { %459 = vperm.xlu1 %894, %v964_v4  }
  0xaa   :  { %v1141_v55 = vpop.permute.xlu0 %455 }
  0xab   :  { %v150_v57 = vpop.permute.xlu1 %149 }
  0xac   :  { %v165_v59 = vmul.f32 %v1146_v56, %v150_v57  ;;  %895 = vset.pattern.permute.xlu1 %v908_v9 }
  0xad   :  { %505 = vperm.xlu1 %895, %v950_v2  }
  0xae   :  { %v169_v60 = vadd.f32 %v165_v59, %v140_v58 }
  0xaf   :  { %v117_v61 = vpop.permute.xlu0 %116 }
  0xb0   :  { %v197_v62 = vadd.f32 %v184_v23, %v169_v60  ;;  %v1151_v63 = vpop.permute.xlu1 %128  ;;  %v248_v23 = vmul.f32 %v1109_v38, %v1075_v21  ;;  %v135_v28 = vmul.f32 %v1131_v47, %v117_v61  ;;  %v164_v21 = vmul.f32 %v1146_v56, %v146_v51  ;;  %v622_v60 = vld [vmem:[%s1372_s5] sm:$0xff] }
  0xb1   :  { %897 = vset.pattern.permute.xlu1 %v906_v1 }
  0xb2   :  { %v201_v3 = vmax.f32 %v197_v62, 0.0  ;;  %383 = vperm.xlu1 %897, %v1040_v11  }
  0xb3   :  { %v1160_v8 = vpop.permute.xlu0 %124 }
  0xb4   :  { %v210_v13 = vmul.f32 %v1156_v0, %v201_v3  ;;  %v624_v3 = vld [vmem:[%s1372_s5 + $0x10] sm:$0xff] }
  0xb5   :  { %v1163_v14 = vpop.permute.xlu1 %225 }
  0xb6   :  { %215 = vst.msk [vmem:[#allocation2 + $0x8] sm:$0xff] %vm213_vm0, %v210_v13  ;;  %388 = vperm.xlu1 %897, %v1048_v12  }
  0xb7   :  { %v316_v17 = vpop.permute.xlu0 %315 }
  0xba   :  { %899 = vset.pattern.permute.xlu1 %v907_v5  ;;  %v1168_v18 = vpop.permute.xlu1 %253 }
  0xbb   :  { %488 = vperm.xlu1 %899, %v964_v4   ;;  %v1171_v19 = vpop.permute.xlu0 %509 }
  0xbd   :  { %v611_v54 = vld [vmem:[#allocation2 + $0x8] sm:$0xff] }
  0xbe   :  { %v258_v26 = vpop.permute.xlu1 %257 }
  0xbf   :  { %v273_v12 = vmul.f32 %v1117_v42, %v258_v26  ;;  %900 = vset.pattern.permute.xlu1 %v909_v10  ;;  %v138_v26 = vmul.f32 %v1131_v47, %v1151_v63 }
  0xc0   :  { %534 = vperm.xlu1 %900, %v950_v2   ;;  %v88_v5 = vpop.permute.xlu0 %87 }
  0xc1   :  { %v277_v29 = vadd.f32 %v273_v12, %v248_v23  ;;  %v106_v15 = vmul.f32 %v1122_v43, %v88_v5 }
  0xc3   :  { %v110_v24 = vadd.f32 %v106_v15, %v81_v27  ;;  %v158_v30 = vpop.permute.xlu1 %157 }
  0xc4   :  { %901 = vset.pattern.permute.xlu1 %v908_v9  ;;  %v100_v16 = vpop.permute.xlu0 %99 }
  0xc5   :  { %513 = vperm.xlu1 %901, %v972_v6   ;;  %v139_v25 = vadd.f32 %v135_v28, %v110_v24  ;;  %v109_v61 = vmul.f32 %v1122_v43, %v100_v16 }
  0xc7   :  { %v168_v32 = vadd.f32 %v164_v21, %v139_v25  ;;  %v247_v21 = vmul.f32 %v1109_v38, %v1163_v14 }
  0xc8   :  { %v179_v33 = vpop.permute.xlu1 %178  ;;  %v291_v2 = vpop.permute.xlu0 %290 }
  0xc9   :  { %v196_v39 = vadd.f32 %v179_v33, %v168_v32  ;;  %517 = vperm.xlu1 %901, %v964_v4   ;;  %v303_v41 = vmul.f32 %v1190_v36, %v291_v2 }
  0xcb   :  { %v200_v9 = vmax.f32 %v196_v39, 0.0  ;;  %v1195_v44 = vadd.f32 %v303_v41, %v1133_v48  ;;  %v331_v48 = vmul.f32 %v1203_v46, %v316_v17  ;;  %v137_v17 = vmul.f32 %v1131_v47, %v1160_v8 }
  0xcc   :  { %v1206_v49 = vpop.permute.xlu0 %480 }
  0xcd   :  { %v209_v6 = vmul.f32 %v1156_v0, %v200_v9  ;;  %902 = vset.pattern.permute.xlu1 %v909_v10  ;;  %v283_v45 = vpop.permute.xlu1 %282 }
  0xce   :  { %546 = vperm.xlu1 %902, %v964_v4   ;;  %v301_v25 = vmul.f32 %v1190_v36, %v283_v45 }
  0xcf   :  { %214 = vst.msk [vmem:[#allocation2] sm:$0xff] %vm213_vm0, %v209_v6 }
  0xd0   :  { %v1214_v58 = vpop.permute.xlu0 %484 }
  0xd1   :  { %v287_v51 = vpop.permute.xlu1 %286 }
  0xd2   :  { %v302_v52 = vmul.f32 %v1190_v36, %v287_v51  ;;  %904 = vset.pattern.permute.xlu1 %v906_v1 }
  0xd3   :  { %572 = vperm.xlu1 %904, %v979_v7   ;;  %v108_v7 = vmul.f32 %v1122_v43, %v1112_v40  ;;  %v113_v40 = vadd.f32 %v109_v61, %v1100_v35  ;;  %v608_v35 = vld [vmem:[%s1375_s4 + $0x10] sm:$0xff] }
  0xd4   :  { %v306_v10 = vadd.f32 %v302_v52, %v277_v29  ;;  %v167_v29 = vmul.f32 %v1146_v56, %v158_v30  ;;  %821 = vmatprep.mubr.msk.f32.mxu1 %vm646_vm1, %v608_v35  ;;  %v1268_v52 = vld [vmem:[%s1374_s1 + $0x1] ss:$0 sm:$0xff] }
  0xd5   :  { %v154_v13 = vpop.permute.xlu0 %153  ;;  %v112_v22 = vadd.f32 %v108_v7, %v1093_v31  ;;  %v142_v27 = vadd.f32 %v138_v26, %v113_v40  ;;  %v606_v31 = vld [vmem:[%s1375_s4] sm:$0xff] }
  0xd6   :  { %v241_v4 = vpop.permute.xlu1 %240  ;;  %v610_v53 = vld [vmem:[#allocation2] sm:$0xff]  ;;  %v1212_v57 = vadd.f32 %v331_v48, %v306_v10  ;;  %v166_v43 = vmul.f32 %v1146_v56, %v154_v13  ;;  %818 = vmatprep.mubr.msk.f32.mxu0 %vm646_vm1, %v606_v31  ;;  %v272_v56 = vmul.f32 %v1117_v42, %v1168_v18 }
  0xd7   :  { %577 = vperm.xlu1 %904, %v1040_v11   ;;  %v824_v59 = vpack.c.bf16 %v611_v54, %v610_v53  ;;  %v250_v62 = vmul.f32 %v1109_v38, %v241_v4  ;;  %v141_v12 = vadd.f32 %v137_v17, %v112_v22  ;;  %v171_v24 = vadd.f32 %v167_v29, %v142_v27  ;;  %v1274_v54 = vld [vmem:[%s1373_s0 + $0xb] ss:$0 sm:$0xff] }
  0xd8   :  { %v276_v2 = vadd.f32 %v272_v56, %v247_v21  ;;  %v468_v29 = vmul.f32 %v1274_v54, %v1141_v55 }
  0xd9   :  { %825 = vmatprep.subr.bf16.mxu0 %v824_v59  ;;  %848 = vmatprep.subr.bf16.mxu1 %v824_v59  ;;  %v170_v5 = vadd.f32 %v166_v43, %v141_v12  ;;  %v345_v40 = vpop.permute.xlu0 %344 }
  0xda   :  { %827 = vmatpush3.bf16.msra.mxu0 %v824_v59  ;;  %854 = vmatpush3.bf16.msra.mxu1 %v824_v59  ;;  %v305_v41 = vadd.f32 %v301_v25, %v276_v2  ;;  %v467_v59 = vmul.f32 %v1274_v54, %v1136_v50 }
  0xdb   :  { %628 = vperm.xlu1 %904, %v622_v60   ;;  %v266_v1 = vpop.permute.xlu1 %265  ;;  %v1287_v60 = vld [vmem:[%s1373_s0 + $0xa] ss:$0 sm:$0xff] }
  0xdc   :  { %v275_v11 = vmul.f32 %v1117_v42, %v266_v1  ;;  %v1261_v42 = vld [vmem:[%s1373_s0 + $0x9] ss:$0 sm:$0xff]  ;;  %v1292_v1 = vld [vmem:[%s1373_s0 + $0xd] ss:$0 sm:$0xff] }
  0xdd   :  { %v360_v43 = vmul.f32 %v1261_v42, %v345_v40  ;;  %v773_v40 = vld [vmem:[%s1374_s1 + $0x2] ss:$0 sm:$0xff] }
  0xde   :  { %v1230_v20 = vadd.f32 %v275_v11, %v250_v62  ;;  %v525_v11 = vmul.f32 %v1292_v1, %v1171_v19 }
  0xdf   :  { %638 = vperm.xlu1 %904, %v624_v3   ;;  %v364_v26 = vadd.f32 %v360_v43, %v1212_v57 }
  0xe0   :  { %v312_v23 = vpop.permute.xlu1 %311 }
  0xe1   :  { %v330_v39 = vmul.f32 %v1203_v46, %v312_v23 }
  0xe3   :  { %v334_v9 = vadd.f32 %v330_v39, %v305_v41 }
  0xe5   :  { %v189_v28 = vpop.permute.xlu1 %188 }
  0xe6   :  { %v198_v8 = vadd.f32 %v189_v28, %v170_v5 }
  0xe8   :  { %v202_v15 = vmax.f32 %v198_v8, 0.0 }
  0xe9   :  { %v194_v16 = vpop.permute.xlu1 %193 }
  0xea   :  { %v211_v47 = vmul.f32 %v1156_v0, %v202_v15  ;;  %v199_v63 = vadd.f32 %v194_v16, %v171_v24 }
  0xec   :  { %216 = vst.msk [vmem:[#allocation2 + $0x10] sm:$0xff] %vm213_vm0, %v211_v47  ;;  %v203_v30 = vmax.f32 %v199_v63, 0.0 }
  0xee   :  { %v212_v32 = vmul.f32 %v1156_v0, %v203_v30  ;;  %v1254_v33 = vpop.permute.xlu1 %294 }
  0xef   :  { %v304_v55 = vmul.f32 %v1190_v36, %v1254_v33 }
  0xf0   :  { %217 = vst.msk [vmem:[#allocation2 + $0x18] sm:$0xff] %vm213_vm0, %v212_v32 }
  0xf1   :  { %v308_v32 = vadd.f32 %v304_v55, %v1230_v20 }
  0xf3   :  { %v341_v18 = vpop.permute.xlu1 %340  ;;  %v612_v6 = vld [vmem:[#allocation2 + $0x10] sm:$0xff] }
  0xf4   :  { %v359_v38 = vmul.f32 %v1261_v42, %v341_v18 }
  0xf6   :  { %v363_v14 = vadd.f32 %v359_v38, %v334_v9 }
  0xf7   :  { %v613_v0 = vld [vmem:[#allocation2 + $0x18] sm:$0xff] }
  0xf8   :  { %v391_v45 = vadd.f32 %v1102_v37, %v363_v14  ;;  %v320_v51 = vpop.permute.xlu1 %319  ;;  %v828_v48 = vpack.c.bf16 %v613_v0, %v612_v6  ;;  %v1280_v37 = vld [vmem:[%s1373_s0 + $0xc] ss:$0 sm:$0xff]  ;;  %v539_v0 = vpop.permute.xlu0 %538 }
  0xf9   :  { %v496_v61 = vmul.f32 %v1280_v37, %v1206_v49  ;;  %v497_v8 = vmul.f32 %v1280_v37, %v1214_v58  ;;  %v332_v56 = vmul.f32 %v1203_v46, %v320_v51 }
  0xfa   :  { %v395_v10 = vmax.f32 %v391_v45, 0.0  ;;  %829 = vmatprep.subr.bf16.mxu0 %v828_v48  ;;  %849 = vmatprep.subr.bf16.mxu1 %v828_v48 }
  0xfb   :  { %831 = vmatpush3.bf16.msra.mxu0 %v828_v48  ;;  %855 = vmatpush3.bf16.msra.mxu1 %v828_v48  ;;  %v336_v21 = vadd.f32 %v332_v56, %v1195_v44 }
  0xfc   :  { %v404_v4 = vmul.f32 %v1268_v52, %v395_v10  ;;  %v324_v53 = vpop.permute.xlu1 %323  ;;  %v543_v48 = vpop.permute.xlu0 %542 }
  0xfd   :  { %v333_v25 = vmul.f32 %v1203_v46, %v324_v53  ;;  %v441_v46 = vmul.f32 %v1287_v60, %v1097_v34 }
  0xfe   :  { %408 = vst.msk [vmem:[#allocation2 + $0x20] sm:$0xff] %vm213_vm0, %v404_v4 }
  0xff   :  { %v337_v18 = vadd.f32 %v333_v25, %v308_v32 }
 0x100   :  { %v568_v34 = vpop.permute.xlu0 %567 }
 0x101   :  { %v425_v7 = vpop.permute.xlu1 %424 }
 0x102   :  { %v442_v62 = vmul.f32 %v1287_v60, %v425_v7 }
 0x104   :  { %v471_v50 = vadd.f32 %v467_v59, %v442_v62  ;;  %v772_v59 = vld [vmem:[%s1373_s0 + $0xe] ss:$0 sm:$0xff] }
 0x105   :  { %v614_v57 = vld [vmem:[#allocation2 + $0x20] sm:$0xff] }
 0x106   :  { %v500_v3 = vadd.f32 %v496_v61, %v471_v50  ;;  %v448_v13 = vpop.permute.xlu1 %447 }
 0x107   :  { %v466_v45 = vmul.f32 %v1274_v54, %v448_v13 }
 0x108   :  { %v1299_v17 = vadd.f32 %v525_v11, %v500_v3 }
 0x109   :  { %v470_v10 = vadd.f32 %v466_v45, %v441_v46 }
 0x10b   :  { %v349_v22 = vpop.permute.xlu1 %348 }
 0x10c   :  { %v361_v58 = vmul.f32 %v1261_v42, %v349_v22 }
 0x10e   :  { %v365_v39 = vadd.f32 %v361_v58, %v336_v21 }
 0x10f   :  { %v353_v23 = vpop.permute.xlu1 %352 }
 0x110   :  { %v362_v2 = vmul.f32 %v1261_v42, %v353_v23 }
 0x112   :  { %v366_v14 = vadd.f32 %v362_v2, %v337_v18 }
 0x114   :  { %v379_v12 = vpop.permute.xlu1 %378 }
 0x115   :  { %v392_v5 = vadd.f32 %v379_v12, %v364_v26 }
 0x117   :  { %v396_v49 = vmax.f32 %v392_v5, 0.0 }
 0x119   :  { %v405_v27 = vmul.f32 %v1268_v52, %v396_v49  ;;  %v477_v28 = vpop.permute.xlu1 %476 }
 0x11a   :  { %v495_v20 = vmul.f32 %v1280_v37, %v477_v28 }
 0x11b   :  { %409 = vst.msk [vmem:[#allocation2 + $0x28] sm:$0xff] %vm213_vm0, %v405_v27 }
 0x11c   :  { %v499_v53 = vadd.f32 %v495_v20, %v470_v10 }
 0x11e   :  { %v430_v19 = vpop.permute.xlu1 %429 }
 0x11f   :  { %v443_v15 = vmul.f32 %v1287_v60, %v430_v19 }
 0x121   :  { %v472_v24 = vadd.f32 %v468_v29, %v443_v15  ;;  %v554_v29 = vmul.f32 %v772_v59, %v539_v0 }
 0x122   :  { %v435_v16 = vpop.permute.xlu1 %434  ;;  %v615_v31 = vld [vmem:[#allocation2 + $0x28] sm:$0xff] }
 0x123   :  { %v832_v35 = vpack.c.bf16 %v615_v31, %v614_v57  ;;  %v1310_v47 = vadd.f32 %v497_v8, %v472_v24  ;;  %v444_v26 = vmul.f32 %v1287_v60, %v435_v16  ;;  %v583_v60 = vpop.permute.xlu0 %582 }
 0x125   :  { %833 = vmatprep.subr.bf16.mxu0 %v832_v35  ;;  %850 = vmatprep.subr.bf16.mxu1 %v832_v35 }
 0x126   :  { %835 = vmatpush3.bf16.msra.mxu0 %v832_v35  ;;  %856 = vmatpush3.bf16.msra.mxu1 %v832_v35 }
 0x127   :  { %v460_v63 = vpop.permute.xlu1 %459 }
 0x128   :  { %v469_v43 = vmul.f32 %v1274_v54, %v460_v63  ;;  %v555_v63 = vmul.f32 %v772_v59, %v543_v48 }
 0x12a   :  { %v473_v27 = vadd.f32 %v469_v43, %v444_v26 }
 0x12c   :  { %v506_v30 = vpop.permute.xlu1 %505 }
 0x12d   :  { %v524_v4 = vmul.f32 %v1292_v1, %v506_v30 }
 0x12f   :  { %v528_v61 = vadd.f32 %v524_v4, %v499_v53 }
 0x131   :  { %v384_v41 = vpop.permute.xlu1 %383 }
 0x132   :  { %v393_v9 = vadd.f32 %v384_v41, %v365_v39 }
 0x134   :  { %v397_v38 = vmax.f32 %v393_v9, 0.0 }
 0x135   :  { %v389_v6 = vpop.permute.xlu1 %388 }
 0x136   :  { %v406_v36 = vmul.f32 %v1268_v52, %v397_v38  ;;  %v394_v33 = vadd.f32 %v389_v6, %v366_v14  ;;  %v607_v14 = vld [vmem:[%s1375_s4 + $0x8] sm:$0xff]  ;;  %v609_v6 = vld [vmem:[%s1375_s4 + $0x18] sm:$0xff] }
 0x138   :  { %410 = vst.msk [vmem:[#allocation2 + $0x30] sm:$0xff] %vm213_vm0, %v406_v36  ;;  %v398_v44 = vmax.f32 %v394_v33, 0.0  ;;  %v634_v36 = vpop.permute.xlu0 %633 }
 0x13a   :  { %v407_v42 = vmul.f32 %v1268_v52, %v398_v44  ;;  %v489_v51 = vpop.permute.xlu1 %488 }
 0x13b   :  { %v498_v12 = vmul.f32 %v1280_v37, %v489_v51  ;;  %v558_v37 = vadd.f32 %v554_v29, %v1299_v17 }
 0x13c   :  { %411 = vst.msk [vmem:[#allocation2 + $0x38] sm:$0xff] %vm213_vm0, %v407_v42  ;;  %v644_v0 = vpop.permute.xlu0 %643 }
 0x13d   :  { %v502_v19 = vadd.f32 %v498_v12, %v473_v27 }
 0x13f   :  { %v535_v7 = vpop.permute.xlu1 %534  ;;  %v616_v50 = vld [vmem:[#allocation2 + $0x30] sm:$0xff] }
 0x140   :  { %v553_v62 = vmul.f32 %v772_v59, %v535_v7 }
 0x142   :  { %v557_v11 = vadd.f32 %v553_v62, %v528_v61 }
 0x143   :  { %v617_v3 = vld [vmem:[#allocation2 + $0x38] sm:$0xff] }
 0x144   :  { %v585_v52 = vadd.f32 %v568_v34, %v557_v11  ;;  %v514_v13 = vpop.permute.xlu1 %513  ;;  %v836_v22 = vpack.c.bf16 %v617_v3, %v616_v50 }
 0x145   :  { %v526_v54 = vmul.f32 %v1292_v1, %v514_v13 }
 0x146   :  { %v589_v23 = vmax.f32 %v585_v52, 0.0  ;;  %837 = vmatprep.subr.bf16.mxu0 %v836_v22  ;;  %851 = vmatprep.subr.bf16.mxu1 %v836_v22 }
 0x147   :  { %839 = vmatpush3.bf16.msra.mxu0 %v836_v22  ;;  %857 = vmatpush3.bf16.msra.mxu1 %v836_v22  ;;  %v530_v31 = vadd.f32 %v526_v54, %v1310_v47 }
 0x148   :  { %v598_v5 = vmul.f32 %v773_v40, %v589_v23  ;;  %v518_v49 = vpop.permute.xlu1 %517 }
 0x149   :  { %v527_v28 = vmul.f32 %v1292_v1, %v518_v49  ;;  %v559_v30 = vadd.f32 %v555_v63, %v530_v31 }
 0x14a   :  { %602 = vst.msk [vmem:[#allocation2 + $0x40] sm:$0xff] %vm213_vm0, %v598_v5 }
 0x14b   :  { %v531_v15 = vadd.f32 %v527_v28, %v502_v19 }
 0x14d   :  { %v547_v8 = vpop.permute.xlu1 %546 }
 0x14e   :  { %v556_v24 = vmul.f32 %v772_v59, %v547_v8 }
 0x150   :  { %v560_v57 = vadd.f32 %v556_v24, %v531_v15 }
 0x151   :  { %v618_v17 = vld [vmem:[#allocation2 + $0x40] sm:$0xff] }
 0x152   :  { %v588_v16 = vadd.f32 %v583_v60, %v560_v57  ;;  %v573_v35 = vpop.permute.xlu1 %572 }
 0x153   :  { %v586_v56 = vadd.f32 %v573_v35, %v558_v37 }
 0x154   :  { %v592_v55 = vmax.f32 %v588_v16, 0.0 }
 0x155   :  { %v590_v58 = vmax.f32 %v586_v56, 0.0 }
 0x156   :  { %v601_v21 = vmul.f32 %v773_v40, %v592_v55  ;;  %v578_v25 = vpop.permute.xlu1 %577 }
 0x157   :  { %v599_v32 = vmul.f32 %v773_v40, %v590_v58  ;;  %v587_v1 = vadd.f32 %v578_v25, %v559_v30 }
 0x158   :  { %605 = vst.msk [vmem:[#allocation2 + $0x58] sm:$0xff] %vm213_vm0, %v601_v21 }
 0x159   :  { %603 = vst.msk [vmem:[#allocation2 + $0x48] sm:$0xff] %vm213_vm0, %v599_v32  ;;  %v591_v2 = vmax.f32 %v587_v1, 0.0 }
 0x15a   :  { %v629_v33 = vpop.permute.xlu1 %628 }
 0x15b   :  { %v600_v47 = vmul.f32 %v773_v40, %v591_v2 }
 0x15d   :  { %604 = vst.msk [vmem:[#allocation2 + $0x50] sm:$0xff] %vm213_vm0, %v600_v47 }
 0x15e   :  { %v639_v45 = vpop.permute.xlu1 %638 }
 0x15f   :  { %v621_v9 = vld [vmem:[#allocation2 + $0x58] sm:$0xff] }
 0x160   :  { %v619_v39 = vld [vmem:[#allocation2 + $0x48] sm:$0xff] }
 0x161   :  { %v840_v41 = vpack.c.bf16 %v619_v39, %v618_v17 }
 0x163   :  { %841 = vmatprep.subr.bf16.mxu0 %v840_v41  ;;  %852 = vmatprep.subr.bf16.mxu1 %v840_v41 }
 0x164   :  { %843 = vmatpush3.bf16.msra.mxu0 %v840_v41  ;;  %858 = vmatpush3.bf16.msra.mxu1 %v840_v41  ;;  %v620_v18 = vld [vmem:[#allocation2 + $0x50] sm:$0xff] }
 0x165   :  { %v844_v38 = vpack.c.bf16 %v621_v9, %v620_v18 }
 0x167   :  { %845 = vmatprep.subr.bf16.mxu0 %v844_v38  ;;  %853 = vmatprep.subr.bf16.mxu1 %v844_v38 }
 0x168   :  { %847 = vmatpush3.bf16.msra.mxu0 %v844_v38  ;;  %859 = vmatpush3.bf16.msra.mxu1 %v844_v38 }
 0x16b   :  { %819 = vmatmul.mubr.msk.f32.vlgmr.msra.gmra.mrb[0].mxu0 %vm646_vm1, %v607_v14  ;;  %822 = vmatmul.mubr.msk.f32.vlgmr.msra.gmra.mrb[0].mxu1 %vm646_vm1, %v609_v6 }
 0x23e   :  { %v820_v44 = vpop.f32.mrb[0].mxu0  ;;  %v823_v46 = vpop.f32.mrb[0].mxu1 }
 0x23f   :  { %v731_v20 = vadd.f32 %v820_v44, %v634_v36  ;;  %v741_v42 = vadd.f32 %v823_v46, %v644_v0  ;;  %v725_v51 = vpop.f32.mrb[1].mxu0  ;;  %v735_v48 = vpop.f32.mrb[1].mxu1 }
 0x240   :  { %v726_v10 = vadd.f32 %v725_v51, %v629_v33  ;;  %v736_v4 = vadd.f32 %v735_v48, %v639_v45 }
 0x241   :  { %v745_v53 = vmax.f32 %v731_v20, 0.0  ;;  %v747_v59 = vmax.f32 %v741_v42, 0.0 }
 0x242   :  { %v744_v7 = vmax.f32 %v726_v10, 0.0  ;;  %v746_v61 = vmax.f32 %v736_v4, 0.0 }
 0x243   :  { %749 = vst.msk [vmem:[%s1376_s6 + $0x8] sm:$0xff] %vm213_vm0, %v745_v53  ;;  %751 = vst.msk [vmem:[%s1376_s6 + $0x18] sm:$0xff] %vm213_vm0, %v747_v59 }
 0x244   :  { %748 = vst.msk [vmem:[%s1376_s6] sm:$0xff] %vm213_vm0, %v744_v7  ;;  %750 = vst.msk [vmem:[%s1376_s6 + $0x10] sm:$0xff] %vm213_vm0, %v746_v61 }

</bundles_post_ra>
